<compile_context>
chip_gen: v7x
topology: tpu7x:2x2x1
jax: 0.10.0
libtpu: 0.0.40
codegen_flags: <defaults>
</compile_context>

<pallas_src>
import jax
import jax.numpy as jnp
from jax.experimental import pallas as pl
from jax.experimental.pallas import tpu as pltpu

_HP = jax.lax.Precision.HIGHEST  # keep f32 accuracy on the MXU


def attention_kernel(x_ref, w_ref, q_ref, out_ref):
    # x_ref: (TB, S, H)  w_ref: (A, H)  q_ref: (A, 1)  out_ref: (TB, 1, H)
    TB, S, H = x_ref.shape
    A = w_ref.shape[0]

    X3 = x_ref[...]                          # (TB, S, H), f32 (single VMEM read)
    X2 = X3.reshape(TB * S, H)               # leading-dim collapse (layout-free)

    # --- projection: one 2-D MXU matmul over all TB*S rows, then ReLU ---
    K2 = jax.lax.dot_general(
        X2, w_ref[...],
        dimension_numbers=(((1,), (1,)), ((), ())),
        preferred_element_type=jnp.float32,
        precision=_HP)                       # (TB*S, A)
    K2 = jnp.maximum(K2, 0.0)
    K3 = K2.reshape(TB, S, A)                # leading-dim split (layout-free)

    # --- beta = tanh(K @ q): lane-axis multiply-reduce (A is tiny) ---
    qrow = q_ref[...][:, 0]                  # (A,)
    beta = jnp.tanh(jnp.sum(K3 * qrow[None, None, :], axis=2))       # (TB, S)

    # --- mask: position (b, s) is real iff any feature is nonzero ---
    mask = (jnp.sum(jnp.abs(X3), axis=2) > 0.0).astype(jnp.float32)  # (TB, S)

    # --- masked softmax over the sequence axis, epsilon = 1e-14 ---
    beta_max = jnp.max(beta, axis=1, keepdims=True)                  # (TB, 1)
    exps = jnp.exp(beta - beta_max)                                  # (TB, S)
    masked_exps = exps * mask
    masked_sums = jnp.sum(masked_exps, axis=1, keepdims=True) + 1e-14
    inv = pl.reciprocal(masked_sums, approx=True)                    # EUP slot
    inv = inv * (2.0 - masked_sums * inv)                            # Newton -> ~f32
    alpha = masked_exps * inv                                        # (TB, S)

    # --- weighted sum over S as a batched MXU matvec (flash-attn P@V style) ---
    out3 = jnp.einsum("bqs,bsh->bqh", alpha[:, None, :], X3,
                      preferred_element_type=jnp.float32,
                      precision=_HP)                                 # (TB, 1, H)
    out_ref[...] = out3.astype(out_ref.dtype)


def attention_forward(X, W, q, *, block_b=None):
    """Pallas forward of Attention.forward(X, L) (L is unused upstream)."""
    B, S, H = X.shape
    A = W.shape[0]
    if block_b is None:
        block_b = B if B <= 8 else 8         # multiple-of-8 batch block when tiling
    assert B % block_b == 0, "batch must be divisible by the batch block size"
    grid = (B // block_b,)

    out = pl.pallas_call(
        attention_kernel,
        out_shape=jax.ShapeDtypeStruct((B, 1, H), jnp.float32),
        grid_spec=pltpu.PrefetchScalarGridSpec(
            num_scalar_prefetch=0,
            grid=grid,
            in_specs=[
                pl.BlockSpec((block_b, S, H), lambda b: (b, 0, 0)),   # X
                pl.BlockSpec((A, H), lambda b: (0, 0)),               # W (resident)
                pl.BlockSpec((A, 1), lambda b: (0, 0)),               # q (resident)
            ],
            out_specs=pl.BlockSpec((block_b, 1, H), lambda b: (b, 0, 0)),
        ),
        compiler_params=pltpu.CompilerParams(
            dimension_semantics=("parallel",)),
    )(X, W, q)
    # Squeeze the helper axis outside the kernel (free XLA reshape).
    return out.reshape(B, H)


def reference_forward(X, W, q):
    """Pure-JAX reference replicating the PyTorch module exactly (f32)."""
    hp = _HP
    K = jnp.maximum(jnp.einsum("bsh,ah->bsa", X, W, precision=hp), 0.0)
    beta = jnp.tanh(jnp.einsum("bsa,az->bsz", K, q, precision=hp)[..., 0])
    mask = (jnp.sum(jnp.abs(X), axis=2) > 0.0).astype(jnp.float32)
    exps = jnp.exp(beta - jnp.max(beta, axis=1, keepdims=True))
    masked_exps = exps * mask
    alpha = masked_exps / (jnp.sum(masked_exps, axis=1, keepdims=True) + 1e-14)
    return jnp.sum(X * alpha[:, :, None], axis=1)


if __name__ == "__main__":
    # Small shapes consistent with the module:
    #   p.hidden_size * p.directions = 32 (feature dim of X)
    #   attn_size = next(x for x in p.out if x > 1) = 16
    batch, seq, hidden, attn_size = 2, 8, 32, 16

    key = jax.random.PRNGKey(0)
    kx, kw, kq = jax.random.split(key, 3)

    X = jax.random.normal(kx, (batch, seq, hidden), dtype=jnp.float32)
    # Zero out trailing positions of the second batch element so the mask
    # (sum(|X|, dim=2) > 0) actually does something.
    pad_mask = (jnp.arange(seq) < 6).astype(jnp.float32)  # last 2 steps zeroed
    X = X.at[1].multiply(pad_mask[:, None])

    # Deterministic synthetic parameters matching the module's shapes.
    # nn.Linear(hidden, attn_size, bias=False): weight (attn_size, hidden)
    W = jax.random.normal(kw, (attn_size, hidden), dtype=jnp.float32) * (1.0 / jnp.sqrt(hidden))
    # q: xavier_normal_ on (attn_size, 1): std = sqrt(2 / (fan_in + fan_out))
    q = jax.random.normal(kq, (attn_size, 1), dtype=jnp.float32) * jnp.sqrt(2.0 / (attn_size + 1))

    out = attention_forward(X, W, q)
    jax.block_until_ready(out)

    ref = reference_forward(X, W, q)
    assert out.shape == (batch, hidden)
    assert jnp.allclose(out, ref, atol=1e-4, rtol=1e-4), "mismatch vs reference"

    print("KERNEL_OK")
</pallas_src>

<mosaic_0001>
module attributes {stable_mosaic.version = 11 : i64} {
  func.func @attention_kernel(%arg0: i32, %arg1: memref<2x8x32xf32, #tpu.memory_space<vmem>>, %arg2: memref<16x32xf32, #tpu.memory_space<vmem>>, %arg3: memref<16x1xf32, #tpu.memory_space<vmem>>, %arg4: memref<2x1x32xf32, #tpu.memory_space<vmem>>) attributes {dimension_semantics = [#tpu.dimension_semantics<parallel>], iteration_bounds = array<i64: 1>, scalar_prefetch = 0 : i64, scratch_operands = 0 : i64, tpu.core_type = #tpu.core_type<tc>, window_params = [{transform_indices = @transform_0, window_bounds = array<i64: 2, 8, 32>}, {pipeline_mode = #tpu.pipeline_mode<synchronous>, transform_indices = @transform_1, window_bounds = array<i64: 16, 32>}, {pipeline_mode = #tpu.pipeline_mode<synchronous>, transform_indices = @transform_2, window_bounds = array<i64: 16, 1>}, {transform_indices = @transform_3, window_bounds = array<i64: 2, 1, 32>}]} {
    %c0 = arith.constant 0 : index
    %c0_0 = arith.constant 0 : index
    %c0_1 = arith.constant 0 : index
    %0 = vector.load %arg1[%c0, %c0_0, %c0_1] : memref<2x8x32xf32, #tpu.memory_space<vmem>>, vector<2x8x32xf32>
    %1 = vector.shape_cast %0 : vector<2x8x32xf32> to vector<16x32xf32>
    %c0_2 = arith.constant 0 : index
    %c0_3 = arith.constant 0 : index
    %2 = vector.load %arg2[%c0_2, %c0_3] : memref<16x32xf32, #tpu.memory_space<vmem>>, vector<16x32xf32>
    %cst = arith.constant dense<0.000000e+00> : vector<16x16xf32>
    %3 = tpu.matmul %1, %2, %cst {dimension_numbers = #tpu.dot_dimension_numbers<[1], [1], [0], [0], [0, 0, 1, 0], [], []>, precision = #tpu.contract_precision<fp32>} : vector<16x32xf32>, vector<16x32xf32>, vector<16x16xf32> -> vector<16x16xf32>
    %cst_4 = arith.constant 0.000000e+00 : f32
    %4 = vector.broadcast %cst_4 : f32 to vector<16x16xf32>
    %5 = arith.maximumf %3, %4 : vector<16x16xf32>
    %6 = vector.shape_cast %5 : vector<16x16xf32> to vector<2x8x16xf32>
    %c0_5 = arith.constant 0 : index
    %c0_6 = arith.constant 0 : index
    %7 = vector.load %arg3[%c0_5, %c0_6] : memref<16x1xf32, #tpu.memory_space<vmem>>, vector<16x1xf32>
    %8 = vector.shape_cast %7 : vector<16x1xf32> to vector<16xf32>
    %9 = vector.shape_cast %8 : vector<16xf32> to vector<1x1x16xf32>
    %10 = vector.broadcast %9 : vector<1x1x16xf32> to vector<2x8x16xf32>
    %11 = arith.mulf %6, %10 : vector<2x8x16xf32>
    %cst_7 = arith.constant dense<0.000000e+00> : vector<2x8xf32>
    %12 = vector.multi_reduction <add>, %11, %cst_7 [2] : vector<2x8x16xf32> to vector<2x8xf32>
    %13 = math.tanh %12 : vector<2x8xf32>
    %14 = math.absf %0 : vector<2x8x32xf32>
    %cst_8 = arith.constant dense<0.000000e+00> : vector<2x8xf32>
    %15 = vector.multi_reduction <add>, %14, %cst_8 [2] : vector<2x8x32xf32> to vector<2x8xf32>
    %cst_9 = arith.constant 0.000000e+00 : f32
    %16 = vector.broadcast %cst_9 : f32 to vector<2x8xf32>
    %17 = arith.cmpf ogt, %15, %16 : vector<2x8xf32>
    %18 = arith.extui %17 : vector<2x8xi1> to vector<2x8xi32>
    %19 = arith.sitofp %18 : vector<2x8xi32> to vector<2x8xf32>
    %cst_10 = arith.constant dense<0xFF800000> : vector<2xf32>
    %20 = vector.multi_reduction <maximumf>, %13, %cst_10 [1] : vector<2x8xf32> to vector<2xf32>
    %21 = vector.shape_cast %20 : vector<2xf32> to vector<2x1xf32>
    %22 = vector.broadcast %21 : vector<2x1xf32> to vector<2x8xf32>
    %23 = arith.subf %13, %22 : vector<2x8xf32>
    %24 = math.exp %23 : vector<2x8xf32>
    %25 = arith.mulf %24, %19 : vector<2x8xf32>
    %cst_11 = arith.constant dense<0.000000e+00> : vector<2xf32>
    %26 = vector.multi_reduction <add>, %25, %cst_11 [1] : vector<2x8xf32> to vector<2xf32>
    %27 = vector.shape_cast %26 : vector<2xf32> to vector<2x1xf32>
    %cst_12 = arith.constant 9.99999982E-15 : f32
    %28 = vector.broadcast %cst_12 : f32 to vector<2x1xf32>
    %29 = arith.addf %27, %28 : vector<2x1xf32>
    %30 = tpu.reciprocal %29 {approx = true} : vector<2x1xf32> -> vector<2x1xf32>
    %31 = arith.mulf %29, %30 : vector<2x1xf32>
    %cst_13 = arith.constant 2.000000e+00 : f32
    %32 = vector.broadcast %cst_13 : f32 to vector<2x1xf32>
    %33 = arith.subf %32, %31 : vector<2x1xf32>
    %34 = arith.mulf %30, %33 : vector<2x1xf32>
    %35 = vector.broadcast %34 : vector<2x1xf32> to vector<2x8xf32>
    %36 = arith.mulf %25, %35 : vector<2x8xf32>
    %37 = vector.shape_cast %36 : vector<2x8xf32> to vector<2x1x8xf32>
    "tpu.trace_start"() <{level = 10 : i32, message = "bqs,bsh->bqh"}> : () -> ()
    %cst_14 = arith.constant dense<0.000000e+00> : vector<2x1x32xf32>
    %38 = tpu.matmul %37, %0, %cst_14 {dimension_numbers = #tpu.dot_dimension_numbers<[2], [1], [1], [2], [0, 0, 0, 1, 1, 2], [0], [0]>, precision = #tpu.contract_precision<fp32>} : vector<2x1x8xf32>, vector<2x8x32xf32>, vector<2x1x32xf32> -> vector<2x1x32xf32>
    "tpu.trace_stop"() : () -> ()
    %c0_15 = arith.constant 0 : index
    %c0_16 = arith.constant 0 : index
    %c0_17 = arith.constant 0 : index
    %39 = vector.load %arg4[%c0_15, %c0_16, %c0_17] : memref<2x1x32xf32, #tpu.memory_space<vmem>>, vector<2x1x32xf32>
    tpu.vector_store %arg4[%c0_15, %c0_16, %c0_17], %38 {strides = array<i32>} : memref<2x1x32xf32, #tpu.memory_space<vmem>>, vector<2x1x32xf32>,
    return
  }
  func.func @transform_0(%arg0: i32) -> (i32, i32, i32) {
    %c0_i32 = arith.constant 0 : i32
    %c0_i32_0 = arith.constant 0 : i32
    %c0_i32_1 = arith.constant 0 : i32
    return %arg0, %c0_i32, %c0_i32_0 : i32, i32, i32
  }
  func.func @transform_1(%arg0: i32) -> (i32, i32) {
    %c0_i32 = arith.constant 0 : i32
    %c0_i32_0 = arith.constant 0 : i32
    %c0_i32_1 = arith.constant 0 : i32
    return %c0_i32, %c0_i32_0 : i32, i32
  }
  func.func @transform_2(%arg0: i32) -> (i32, i32) {
    %c0_i32 = arith.constant 0 : i32
    %c0_i32_0 = arith.constant 0 : i32
    %c0_i32_1 = arith.constant 0 : i32
    return %c0_i32, %c0_i32_0 : i32, i32
  }
  func.func @transform_3(%arg0: i32) -> (i32, i32, i32) {
    %c0_i32 = arith.constant 0 : i32
    %c0_i32_0 = arith.constant 0 : i32
    %c0_i32_1 = arith.constant 0 : i32
    return %arg0, %c0_i32, %c0_i32_0 : i32, i32, i32
  }
}

</mosaic_0001>

<bundles_post_ra>
// kernel: tpu_custom_call.1
= control target key start
LH: loop header
LB: loop body
LE: loop exit
PB: predicated region body
PF: predicated region fallthrough
CT: control target
= control target key end

     0   :  { %8 = vsyncpa [#allocation3], 0  ;;  %s2036_s0 = inlined_call_operand.vmem [shape: f32[2,8,32], index: 0, kind: input, shape index: {}]   ;;  %s2037_s1 = inlined_call_operand.hbm [shape: f32[16,32], index: 1, kind: input, shape index: {}]   ;;  %s2038_s2 = inlined_call_operand.vmem [shape: f32[16,1], index: 2, kind: input, shape index: {}]   ;;  %s2039_s3 = inlined_call_operand.hbm [shape: f32[2,1,32], index: 3, kind: output, shape index: {}]  }
   0x1   :  { %9 = vsyncpa [#allocation4], 0  ;;  %s1894_s12 = smov [#allocation2]   ;;  %s1846_s16 = scalar_lea.hbm %s2037_s1, 256 }
   0x2   :  { %s17_s13 = sshll.u32 %s1894_s12, 4  ;;  %p1847_p0 = scmp.ne.s32.totalorder %s2037_s1, %s1846_s16  ;;  %s18_s13 = int_to_ptr.vmem [resolvable:$true] %s17_s13 }
   0x3   :  { %p1850_p1 = scmp.lt.u32.totalorder %s1846_s16, %s2037_s1 }
   0x5   :  { %p1852_p2 = pnand %p1850_p1, %p1847_p0 }
   0x7   :  { %1855 = shalt.err (!%p1852_p2)
}
   0x8   :  { %s1856_s21 = scalar_lea.vmem %s18_s13, 256  ;;  %p1861_p4 = scmp.lt.s32.totalorder %s18_s13, %s18_s13 }
   0x9   :  { %p1857_p3 = scmp.ne.s32.totalorder %s18_s13, %s1856_s21  ;;  %p1862_p5 = scmp.lt.s32.totalorder %s1856_s21, %s1856_s21 }
   0xb   :  { %p1863_p6 = por %p1862_p5, %p1861_p4 }
   0xd   :  { %p1864_p7 = pnand %p1863_p6, %p1857_p3 }
   0xf   :  { %1867 = shalt.err (!%p1864_p7)
}
  0x10   :  { %s1895_s22 = smov 128   ;;  %s1896_s23 = smov 8  }
  0x11   :  { %23 = dma.hbm_to_vmem [thread:$0]  %s2037_s1, 256, %s18_s13, [#allocation3], %s1895_s22, %s1895_s22, %s1896_s23  }
  0x12   :  { %1890 = dma.done.wait [#allocation3], 256  }
  0x13   :  { %1891 = vsyncadd [#allocation3], 4294967040  ;;  %v1897_v0 = vmov 0   ;;  %vm33_vm0 = vcmask 261120   ;;  %v31_v1 = vld [vmem:[#allocation2] sm:$0xff]  ;;  %v32_v2 = vld [vmem:[#allocation2 + $0x8] sm:$0xff]  ;;  %v560_v35 = vlaneseq }
  0x14   :  { %1834 = vset.pattern.permute.xlu0 %v1897_v0  ;;  %1835 = vset.pattern.permute.xlu1 %v1897_v0  ;;  %v1938_v3 = vld [vmem:[%s2036_s0] sm:$0xff]  ;;  %v41_v4 = vsel %vm33_vm0, %v31_v1, 0  ;;  %v44_v5 = vsel %vm33_vm0, %v32_v2, 0  ;;  %v1947_v7 = vld [vmem:[%s2036_s0 + $0x8] sm:$0xff]  ;;  %vm571_vm1 = vcmask 130112   ;;  %vm589_vm2 = vcmask 130048  }
  0x15   :  { %v35_v6 = vsel %vm33_vm0, %v1938_v3, 0  ;;  %v550_v8 = vld [vmem:[%s2038_s2] sm:$0xff]  ;;  %v47_v9 = vand.u32 4294901760, %v41_v4  ;;  %v50_v10 = vand.u32 4294901760, %v44_v5  ;;  %v38_v12 = vsel %vm33_vm0, %v1947_v7, 0  ;;  %v551_v14 = vld [vmem:[%s2038_s2 + $0x8] sm:$0xff] }
  0x16   :  { %v113_v11 = vand.u32 4294901760, %v35_v6  ;;  %555 = vperm.xlu0 %1834, %v550_v8   ;;  %v123_v13 = vand.u32 4294901760, %v38_v12  ;;  %v561_v36 = vand.u32 127, %v560_v35  ;;  %v1957_v38 = vshrl.u32 %v560_v35, 7  ;;  %s1900_s0 = smov [#allocation5]  }
  0x17   :  { %v1771_v15 = vpack.c.bf16 %v50_v10, %v47_v9  ;;  %v135_v17 = vsub.f32 %v41_v4, %v47_v9  ;;  %v142_v18 = vsub.f32 %v44_v5, %v50_v10  ;;  %v598_v54 = vand.u32 2147483647, %v1938_v3  ;;  %s1607_s2 = sshll.u32 %s1900_s0, 4  ;;  %s1608_s2 = int_to_ptr.vmem [resolvable:$true] %s1607_s2 }
  0x18   :  { %v114_v16 = vsub.f32 %v35_v6, %v113_v11  ;;  %v124_v19 = vsub.f32 %v38_v12, %v123_v13  ;;  %v566_v39 = vadd.s32 4294967288, %v561_v36  ;;  %v1960_v40 = vsub.s32 %v561_v36, %v1957_v38  ;;  %s1868_s6 = scalar_lea.vmem %s1608_s2, 32  ;;  %p1873_p9 = scmp.lt.s32.totalorder %s1608_s2, %s1608_s2 }
  0x19   :  { %1772 = vmatprep.subr.bf16.mxu0 %v1771_v15  ;;  %v136_v21 = vand.u32 4294901760, %v135_v17  ;;  %v143_v22 = vand.u32 4294901760, %v142_v18  ;;  %v1779_v33 = vpack.c.bf16 %v142_v18, %v135_v17  ;;  %v599_v55 = vand.u32 2147483647, %v1947_v7  ;;  %p1869_p8 = scmp.ne.s32.totalorder %s1608_s2, %s1868_s6  ;;  %p1874_p10 = scmp.lt.s32.totalorder %s1868_s6, %s1868_s6 }
  0x1a   :  { %v115_v20 = vand.u32 4294901760, %v114_v16  ;;  %558 = vperm.xlu0 %1834, %v551_v14   ;;  %1774 = vmatpush3.bf16.xpose.msra.mxu0 %v1771_v15  ;;  %v125_v23 = vand.u32 4294901760, %v124_v19  ;;  %v569_v41 = vsub.s32 %v566_v39, %v1957_v38  ;;  %v600_v56 = vsel %vm33_vm0, %v598_v54, 0.0 }
  0x1b   :  { %v137_v25 = vsub.f32 %v135_v17, %v136_v21  ;;  %v144_v26 = vsub.f32 %v142_v18, %v143_v22  ;;  %v1787_v34 = vpack.c.bf16 %v143_v22, %v136_v21  ;;  %v603_v57 = vsel %vm33_vm0, %v599_v55, 0.0  ;;  %p1875_p11 = por %p1874_p10, %p1873_p9 }
  0x1c   :  { %v116_v24 = vsub.f32 %v114_v16, %v115_v20  ;;  %v126_v27 = vsub.f32 %v124_v19, %v125_v23  ;;  %vm573_vm3 = vcmask 1041409   ;;  %vm624_vm4 = vcmask 58368  }
  0x1d   :  { %v138_v29 = vand.u32 4294901760, %v137_v25  ;;  %v145_v30 = vand.u32 4294901760, %v144_v26  ;;  %v1898_v2 = vmov 0.0   ;;  %v631_v4 = vsub.s32 0, %v1957_v38  ;;  %p1876_p12 = pnand %p1875_p11, %p1869_p8 }
  0x1e   :  { %v117_v28 = vand.u32 4294901760, %v116_v24  ;;  %v127_v31 = vand.u32 4294901760, %v126_v27  ;;  %1711 = vmatprep.subr.mxu1 %v1898_v2  ;;  %v635_v5 = vsub.s32 1, %v1957_v38  ;;  %v698_v38 = vand.u32 4294901760, %v1938_v3 }
  0x1f   :  { %v1775_v32 = vpack.c.bf16 %v145_v30, %v138_v29  ;;  %vm1899_vm7 = vmmov 0   ;;  %vm694_vm8 = vcmask 64512   ;;  %v1154_v54 = vand.u32 4294901760, %v1947_v7 }
  0x20   :  { %1673 = vmatprep.mubr.f32.mxu0 %v117_v28  ;;  %1713 = vmatprep.mubr.msk.f32.mxu1 %vm1899_vm7, %v1898_v2  ;;  %v775_v39 = vsub.f32 %v1938_v3, %v698_v38  ;;  %vm1599_vm9 = vcmask 253952  }
  0x21   :  { %1674 = vmatmul.mubr.f32.vlgmr.msra.gmra.mrb[0].mxu0 %v127_v31  ;;  %1776 = vmatprep.subr.bf16.mxu0 %v1775_v32 }
  0x22   :  { %1778 = vmatpush3.bf16.xpose.msra.mxu0 %v1775_v32  ;;  %1680 = vmatprep.mubr.f32.mxu0 %v113_v11 }
  0x23   :  { %1780 = vmatprep.subr.bf16.mxu0 %v1779_v33  ;;  %1712 = vmatpush3.msra.mxu1 %v698_v38 }
  0x24   :  { %1716 = vmatprep.subr.mxu1 %v1898_v2 }
  0x29   :  { %1681 = vmatmul.mubr.f32.vlgmr.msra.gmra.mrb[0].mxu0 %v123_v13 }
  0x2a   :  { %1782 = vmatpush3.bf16.xpose.msra.mxu0 %v1779_v33  ;;  %1687 = vmatprep.mubr.f32.mxu0 %v114_v16 }
  0x2b   :  { %1784 = vmatprep.subr.bf16.mxu0 %v1771_v15 }
  0x31   :  { %1688 = vmatmul.mubr.f32.vlgmr.msra.gmra.mrb[0].mxu0 %v124_v19 }
  0x32   :  { %1786 = vmatpush3.bf16.xpose.msra.mxu0 %v1771_v15  ;;  %1694 = vmatprep.mubr.f32.mxu0 %v115_v20 }
  0x33   :  { %1788 = vmatprep.subr.bf16.mxu0 %v1787_v34 }
  0x39   :  { %1695 = vmatmul.mubr.f32.vlgmr.msra.gmra.mrb[0].mxu0 %v125_v23 }
  0x3a   :  { %1790 = vmatpush3.bf16.xpose.msra.mxu0 %v1787_v34  ;;  %1701 = vmatprep.mubr.f32.mxu0 %v113_v11 }
  0x3b   :  { %1792 = vmatprep.subr.bf16.mxu0 %v1771_v15 }
  0x41   :  { %1702 = vmatmul.mubr.f32.vlgmr.msra.gmra.mrb[0].mxu0 %v123_v13 }
  0x42   :  { %1794 = vmatpush3.bf16.xpose.msra.mxu0 %v1771_v15  ;;  %1708 = vmatprep.mubr.f32.mxu0 %v113_v11 }
  0x49   :  { %1709 = vmatmul.mubr.f32.vlgmr.msra.gmra.mrb[0].mxu0 %v123_v13 }
  0x95   :  { %v556_v37 = vpop.permute.xlu0 %555 }
  0x96   :  { %v565_v43 = vrot.slane %v556_v37, %v1960_v40 }
  0x99   :  { %v559_v42 = vpop.permute.xlu0 %558 }
  0x9a   :  { %v570_v44 = vrot.slane %v559_v42, %v569_v41 }
  0x9c   :  { %v572_v49 = vsel %vm571_vm1, %v570_v44, %v565_v43  ;;  %v776_v44 = vand.u32 4294901760, %v775_v39 }
 0x11c   :  { %v1710_v45 = vpop.f32.mrb[0].mxu0 }
 0x11d   :  { %v538_v46 = vpop.f32.mrb[1].mxu0  ;;  %v549_v47 = vmax.f32 %v1710_v45, 0.0 }
 0x11e   :  { %v548_v48 = vmax.f32 %v538_v46, 0.0 }
 0x11f   :  { %v588_v52 = vmul.f32 %v572_v49, %v549_v47  ;;  %v777_v47 = vsub.f32 %v775_v39, %v776_v44 }
 0x120   :  { %v587_v50 = vmul.f32 %v572_v49, %v548_v48 }
 0x121   :  { %v593_v53 = vsel %vm589_vm2, %v588_v52, 0.0 }
 0x122   :  { %v590_v51 = vsel %vm589_vm2, %v587_v50, 0.0  ;;  %v778_v50 = vand.u32 4294901760, %v777_v47 }
 0x123   :  { %591 = vadd.xlane.f32.xlu1 %v590_v51 }
 0x127   :  { %594 = vadd.xlane.f32.xlu1 %v593_v53 }
 0x12b   :  { %601 = vadd.xlane.f32.xlu1 %v600_v56  ;;  %v1231_v56 = vsub.f32 %v1947_v7, %v1154_v54 }
 0x12f   :  { %604 = vadd.xlane.f32.xlu1 %v603_v57 }
 0x1b0   :  { %v592_v58 = vpop.xlane.xlu1 %591 }
 0x1b1   :  { %1836 = vtanh.f32 %v592_v58 }
 0x1b4   :  { %v595_v59 = vpop.xlane.xlu1 %594 }
 0x1b5   :  { %1838 = vtanh.f32 %v595_v59 }
 0x1b8   :  { %v602_v14 = vpop.xlane.xlu1 %601 }
 0x1b9   :  { %vm606_vm5 = vcmp.gt.f32.partialorder %v602_v14, 0.0 }
 0x1ba   :  { %v1619_v16 = vsel %vm606_vm5, 1.0, %v1898_v2 }
 0x1bb   :  { %v1837_v60 = vpop.eup %1836 }
 0x1bc   :  { %v617_v62 = vrot.slane %v1837_v60, %v1960_v40  ;;  %v605_v15 = vpop.xlane.xlu1 %604 }
 0x1bd   :  { %vm607_vm6 = vcmp.gt.f32.partialorder %v605_v15, 0.0 }
 0x1be   :  { %v1620_v20 = vsel %vm607_vm6, 1.0, %v1898_v2 }
 0x1bf   :  { %v1839_v61 = vpop.eup %1838 }
 0x1c0   :  { %v621_v63 = vrot.slane %v1839_v61, %v1960_v40 }
 0x1c2   :  { %v622_v0 = vsel %vm573_vm3, %v621_v63, %v617_v62 }
 0x1c3   :  { %v625_v1 = vsel %vm624_vm4, %v622_v0, -inf }
 0x1c4   :  { %626 = vmax.xlane.f32.xlu0 %v625_v1 }
 0x251   :  { %v627_v6 = vpop.xlane.xlu0 %626 }
 0x252   :  { %v632_v8 = vrot.slane %v627_v6, %v631_v4  ;;  %v636_v9 = vrot.slane %v627_v6, %v635_v5 }
 0x254   :  { %v639_v10 = vsub.f32 %v1837_v60, %v632_v8  ;;  %v640_v11 = vsub.f32 %v1839_v61, %v636_v9 }
 0x256   :  { %v641_v12 = vmul.f32 1.442695, %v639_v10  ;;  %v643_v13 = vmul.f32 1.442695, %v640_v11 }
 0x258   :  { %1840 = vpow2.f32 %v641_v12 }
 0x259   :  { %1842 = vpow2.f32 %v643_v13 }
 0x262   :  { %v1841_v17 = vpop.eup %1840 }
 0x263   :  { %v645_v18 = vmul.f32 %v1841_v17, %v1619_v16  ;;  %v1843_v19 = vpop.eup %1842 }
 0x264   :  { %v646_v21 = vmul.f32 %v1843_v19, %v1620_v20 }
 0x265   :  { %650 = vperm.xlu1 %1835, %v645_v18  }
 0x269   :  { %653 = vperm.xlu1 %1835, %v646_v21  }
 0x2e4   :  { %v651_v22 = vpop.permute.xlu1 %650 }
 0x2e5   :  { %v658_v24 = vrot.slane %v651_v22, %v1960_v40 }
 0x2e8   :  { %v654_v23 = vpop.permute.xlu1 %653 }
 0x2e9   :  { %v662_v25 = vrot.slane %v654_v23, %v1960_v40 }
 0x2eb   :  { %v663_v26 = vsel %vm573_vm3, %v662_v25, %v658_v24 }
 0x2ec   :  { %v665_v27 = vsel %vm624_vm4, %v663_v26, 0.0 }
 0x2ed   :  { %666 = vadd.xlane.f32.xlu1 %v665_v27 }
 0x37a   :  { %v667_v28 = vpop.xlane.xlu1 %666 }
 0x37b   :  { %v668_v29 = vadd.f32 1e-14, %v667_v28 }
 0x37d   :  { %1844 = vrcp.f32 %v668_v29 }
 0x387   :  { %v1845_v30 = vpop.eup %1844 }
 0x388   :  { %v670_v31 = vmul.f32 %v1845_v30, %v668_v29 }
 0x38a   :  { %v671_v32 = vsub.f32 2.0, %v670_v31 }
 0x38c   :  { %v672_v33 = vmul.f32 %v1845_v30, %v671_v32 }
 0x38e   :  { %v677_v34 = vrot.slane %v672_v33, %v631_v4  ;;  %v681_v36 = vrot.slane %v672_v33, %v635_v5 }
 0x390   :  { %v684_v35 = vmul.f32 %v677_v34, %v645_v18  ;;  %v685_v37 = vmul.f32 %v681_v36, %v646_v21 }
 0x392   :  { %688 = vperm.xlu0 %1834, %v684_v35  }
 0x396   :  { %1145 = vperm.xlu0 %1834, %v685_v37  }
 0x411   :  { %v689_v41 = vpop.permute.xlu0 %688 }
 0x412   :  { %v693_v42 = vrot.slane %v689_v41, %v1960_v40 }
 0x414   :  { %v695_v43 = vsel %vm694_vm8, %v693_v42, 0 }
 0x415   :  { %v763_v45 = vand.u32 4294901760, %v695_v43  ;;  %v1146_v3 = vpop.permute.xlu0 %1145 }
 0x416   :  { %v1150_v52 = vrot.slane %v1146_v3, %v1960_v40  ;;  %v1232_v40 = vand.u32 4294901760, %v1231_v56 }
 0x417   :  { %v764_v46 = vsub.f32 %v695_v43, %v763_v45 }
 0x418   :  { %v1151_v53 = vsel %vm694_vm8, %v1150_v52, 0  ;;  %v1233_v59 = vsub.f32 %v1231_v56, %v1232_v40 }
 0x419   :  { %v765_v48 = vand.u32 4294901760, %v764_v46  ;;  %v1219_v55 = vand.u32 4294901760, %v1151_v53 }
 0x41a   :  { %v1234_v61 = vand.u32 4294901760, %v1233_v59 }
 0x41b   :  { %v766_v49 = vsub.f32 %v764_v46, %v765_v48  ;;  %v1220_v57 = vsub.f32 %v1151_v53, %v1219_v55 }
 0x41d   :  { %v767_v51 = vand.u32 4294901760, %v766_v49  ;;  %v1221_v58 = vand.u32 4294901760, %v1220_v57 }
 0x41f   :  { %1714 = vmatmul.mubr.f32.vlgmr.msra.gmra.mrb[0].mxu1 %v767_v51  ;;  %v1222_v60 = vsub.f32 %v1220_v57, %v1221_v58 }
 0x420   :  { %1717 = vmatpush3.msra.mxu1 %v778_v50  ;;  %1718 = vmatprep.mubr.msk.f32.mxu1 %vm1899_vm7, %v1898_v2 }
 0x421   :  { %1721 = vmatprep.subr.mxu1 %v1898_v2  ;;  %v1223_v62 = vand.u32 4294901760, %v1222_v60 }
 0x427   :  { %1719 = vmatmul.mubr.f32.vlgmr.msra.gmra.mrb[0].mxu1 %v763_v45 }
 0x428   :  { %1722 = vmatpush3.msra.mxu1 %v775_v39  ;;  %1723 = vmatprep.mubr.msk.f32.mxu1 %vm1899_vm7, %v1898_v2 }
 0x429   :  { %1726 = vmatprep.subr.mxu1 %v1898_v2 }
 0x42f   :  { %1724 = vmatmul.mubr.f32.vlgmr.msra.gmra.mrb[0].mxu1 %v764_v46 }
 0x430   :  { %1727 = vmatpush3.msra.mxu1 %v698_v38  ;;  %1728 = vmatprep.mubr.msk.f32.mxu1 %vm1899_vm7, %v1898_v2 }
 0x431   :  { %1731 = vmatprep.subr.mxu1 %v1898_v2 }
 0x437   :  { %1729 = vmatmul.mubr.f32.vlgmr.msra.gmra.mrb[0].mxu1 %v765_v48 }
 0x438   :  { %1732 = vmatpush3.msra.mxu1 %v776_v44  ;;  %1733 = vmatprep.mubr.msk.f32.mxu1 %vm1899_vm7, %v1898_v2 }
 0x439   :  { %1736 = vmatprep.subr.mxu1 %v1898_v2 }
 0x43f   :  { %1734 = vmatmul.mubr.f32.vlgmr.msra.gmra.mrb[0].mxu1 %v763_v45 }
 0x440   :  { %1737 = vmatpush3.msra.mxu1 %v698_v38  ;;  %1738 = vmatprep.mubr.msk.f32.mxu1 %vm1899_vm7, %v1898_v2 }
 0x441   :  { %1741 = vmatprep.subr.mxu1 %v1898_v2 }
 0x447   :  { %1739 = vmatmul.mubr.f32.vlgmr.msra.gmra.mrb[0].mxu1 %v763_v45 }
 0x448   :  { %1742 = vmatpush3.msra.mxu1 %v1154_v54  ;;  %1743 = vmatprep.mubr.msk.f32.mxu1 %vm1899_vm7, %v1898_v2 }
 0x449   :  { %1746 = vmatprep.subr.mxu1 %v1898_v2 }
 0x44b   :  { %1744 = vmatmul.mubr.f32.vlgmr.msra.gmra.mrb[2].mxu1 %v1223_v62 }
 0x44c   :  { %1747 = vmatpush3.msra.mxu1 %v1234_v61  ;;  %1748 = vmatprep.mubr.msk.f32.mxu1 %vm1899_vm7, %v1898_v2 }
 0x44d   :  { %1751 = vmatprep.subr.mxu1 %v1898_v2 }
 0x453   :  { %1749 = vmatmul.mubr.f32.vlgmr.msra.gmra.mrb[2].mxu1 %v1219_v55 }
 0x454   :  { %1752 = vmatpush3.msra.mxu1 %v1231_v56  ;;  %1753 = vmatprep.mubr.msk.f32.mxu1 %vm1899_vm7, %v1898_v2 }
 0x455   :  { %1756 = vmatprep.subr.mxu1 %v1898_v2 }
 0x45b   :  { %1754 = vmatmul.mubr.f32.vlgmr.msra.gmra.mrb[2].mxu1 %v1220_v57 }
 0x45c   :  { %1757 = vmatpush3.msra.mxu1 %v1154_v54  ;;  %1758 = vmatprep.mubr.msk.f32.mxu1 %vm1899_vm7, %v1898_v2 }
 0x45d   :  { %1761 = vmatprep.subr.mxu1 %v1898_v2 }
 0x463   :  { %1759 = vmatmul.mubr.f32.vlgmr.msra.gmra.mrb[2].mxu1 %v1221_v58 }
 0x464   :  { %1762 = vmatpush3.msra.mxu1 %v1232_v40  ;;  %1763 = vmatprep.mubr.msk.f32.mxu1 %vm1899_vm7, %v1898_v2 }
 0x465   :  { %1766 = vmatprep.subr.mxu1 %v1898_v2 }
 0x46b   :  { %1764 = vmatmul.mubr.f32.vlgmr.msra.gmra.mrb[2].mxu1 %v1219_v55 }
 0x46c   :  { %1767 = vmatpush3.msra.mxu1 %v1154_v54  ;;  %1768 = vmatprep.mubr.msk.f32.mxu1 %vm1899_vm7, %v1898_v2 }
 0x473   :  { %1769 = vmatmul.mubr.f32.vlgmr.msra.gmra.mrb[2].mxu1 %v1219_v55 }
 0x51a   :  { %v1139_v7 = vpop.f32.mrb[0].mxu1 }
 0x51b   :  { %1600 = vst.msk [vmem:[#allocation5] sm:$0x1] %vm1599_vm9, %v1139_v7  ;;  %v1740_v63 = vpop.f32.mrb[1].mxu1 }
 0x546   :  { %v1595_v0 = vpop.f32.mrb[2].mxu1 }
 0x547   :  { %1601 = vst.msk [vmem:[#allocation5 + $0x1] sm:$0x1] %vm1599_vm9, %v1595_v0  ;;  %v1770_v1 = vpop.f32.mrb[3].mxu1 }
 0x548   :  { %1879 = shalt.err (!%p1876_p12)
}
 0x549   :  { %s1880_s9 = scalar_lea.hbm %s2039_s3, 32 }
 0x54a   :  { %p1881_p13 = scmp.ne.s32.totalorder %s2039_s3, %s1880_s9  ;;  %p1884_p0 = scmp.lt.u32.totalorder %s1880_s9, %s2039_s3 }
 0x54c   :  { %p1886_p1 = pnand %p1884_p0, %p1881_p13 }
 0x54e   :  { %1889 = shalt.err (!%p1886_p1)
}
 0x54f   :  { %s1901_s14 = smov 16   ;;  %s1902_s15 = smov 1  }
 0x550   :  { %1613 = dma.vmem_to_hbm [thread:$0]  %s1608_s2, 32, %s2039_s3, [#allocation4], %s1901_s14, %s1901_s14, %s1902_s15  }
 0x551   :  { %1892 = dma.done.wait [#allocation4], 32  }
 0x552   :  { %1893 = vsyncadd [#allocation4], 4294967264 }
 0x553   :  { %1617 = vsyncpa [#allocation3], 1 }
 0x554   :  { %1618 = vsyncpa [#allocation4], 1 }

</bundles_post_ra>
